<compile_context>
chip_gen: v6e
topology: v6e:2x2x1
jax: 0.10.0
libtpu: 0.0.40
codegen_flags: <defaults>
</compile_context>

<pallas_src>
import math
import functools

import jax
import jax.numpy as jnp
from jax import lax
from jax.experimental import pallas as pl
from jax.experimental.pallas import tpu as pltpu


_LANE = 128
# Large finite negative: identical softmax result to -inf here (the diagonal is
# never masked), but robust if the kernel is ever reused with full-row masks.
_MASK_VALUE = -1e30


def _round_up(x, m):
    return ((x + m - 1) // m) * m


def _attn_head_kernel(x_ref, wqkv_ref, bqkv_ref, wout_ref, bout_ref,
                      o_ref, acc_ref, *, dh_p, scale, causal):
    """One (batch, head) grid step.

    x_ref:    (1, S, D_p)       bf16 activations (same block for every head)
    wqkv_ref: (1, D_p, 3*dh_p)  bf16 per-head in_proj slab [Wq | Wk | Wv]
    bqkv_ref: (1, 1, 3*dh_p)    f32  per-head in_proj bias
    wout_ref: (1, dh_p, D_p)    bf16 per-head out_proj slab
    bout_ref: (1, D_p)          f32  out_proj bias (added once, at head 0)
    o_ref:    (1, S, D_p)       output block (written on the last head)
    acc_ref:  (S, D_p)          f32 VMEM accumulator, resident across heads
    """
    h = pl.program_id(1)
    last_h = pl.num_programs(1) - 1

    x = x_ref[0]                                                   # (S, D_p) bf16
    S = x.shape[0]

    # in_proj for this head: (S, D_p) @ (D_p, 3*dh_p), f32 accumulation.
    qkv = jnp.dot(x, wqkv_ref[0], preferred_element_type=jnp.float32)
    qkv = qkv + bqkv_ref[0]                                        # (S, 3*dh_p) f32

    # Fold 1/sqrt(d_head) into Q (cheaper than scaling the (S, S) scores).
    q = (qkv[:, :dh_p] * scale).astype(jnp.bfloat16)
    k = qkv[:, dh_p:2 * dh_p].astype(jnp.bfloat16)
    v = qkv[:, 2 * dh_p:3 * dh_p].astype(jnp.bfloat16)

    # scores = Q @ K^T  (contract the padded head dim; padded columns are 0).
    scores = lax.dot_general(q, k, (((1,), (1,)), ((), ())),
                             preferred_element_type=jnp.float32)   # (S, S) f32

    if causal:
        row = lax.broadcasted_iota(jnp.int32, (S, S), 0)
        col = lax.broadcasted_iota(jnp.int32, (S, S), 1)
        scores = jnp.where(col > row, _MASK_VALUE, scores)

    # Numerically-stable softmax in f32; reciprocal on the EUP slot.
    m = jnp.max(scores, axis=-1, keepdims=True)
    e = jnp.exp(scores - m)
    denom = jnp.sum(e, axis=-1, keepdims=True)
    p = (e * pl.reciprocal(denom, approx=True)).astype(jnp.bfloat16)

    # P @ V -> (S, dh_p), then fold this head's slice of out_proj and accumulate.
    oh = jnp.dot(p, v, preferred_element_type=jnp.float32).astype(jnp.bfloat16)
    contrib = jnp.dot(oh, wout_ref[0], preferred_element_type=jnp.float32)

    @pl.when(h == 0)
    def _init():
        acc_ref[...] = jnp.broadcast_to(bout_ref[...], acc_ref.shape)

    acc_ref[...] += contrib

    @pl.when(h == last_h)
    def _finalize():
        o_ref[0] = acc_ref[...].astype(o_ref.dtype)


def self_attention(x, w_in, b_in, w_out, b_out, *, n_heads, causal_mask=False):
    """Pallas TPU equivalent of SelfAttention.forward(x, causal_mask).

    x:     (B, S, D) float32
    w_in:  (3D, D)   nn.Linear(d_embed, 3*d_embed).weight
    b_in:  (3D,)
    w_out: (D, D)    nn.Linear(d_embed, d_embed).weight
    b_out: (D,)
    """
    B, S, D = x.shape
    assert D % n_heads == 0
    H = n_heads
    d_head = D // H

    # Lane-dense padding (no-op when already aligned).
    D_p = _round_up(D, _LANE)
    dh_p = _round_up(d_head, _LANE)

    f32 = jnp.float32
    w_in = jnp.asarray(w_in, f32)
    b_in = jnp.asarray(b_in, f32)
    w_out = jnp.asarray(w_out, f32)
    b_out = jnp.asarray(b_out, f32)

    def head_major_w(w_rows):
        # nn.Linear: y = x @ W.T ; row (h*d_head + j) of W -> column j of head h.
        w = w_rows.reshape(H, d_head, D)                 # (H, dh, D)
        w = jnp.transpose(w, (0, 2, 1))                  # (H, D, dh)
        return jnp.pad(w, ((0, 0), (0, D_p - D), (0, dh_p - d_head)))

    def head_major_b(b_rows):
        b = b_rows.reshape(H, 1, d_head)
        return jnp.pad(b, ((0, 0), (0, 0), (0, dh_p - d_head)))

    wq, wk, wv = (head_major_w(w_in[i * D:(i + 1) * D]) for i in range(3))
    w_qkv_h = jnp.concatenate([wq, wk, wv], axis=-1).astype(jnp.bfloat16)
    # -> (H, D_p, 3*dh_p)

    b_qkv_h = jnp.concatenate(
        [head_major_b(b_in[i * D:(i + 1) * D]) for i in range(3)], axis=-1)
    # -> (H, 1, 3*dh_p) f32

    # out_proj: y = attn @ W_out.T ; W_out.T[h*dh + j, m] -> w_out_h[h, j, m].
    w_out_h = w_out.T.reshape(H, d_head, D)
    w_out_h = jnp.pad(w_out_h, ((0, 0), (0, dh_p - d_head), (0, D_p - D)))
    w_out_h = w_out_h.astype(jnp.bfloat16)               # (H, dh_p, D_p)

    b_out_p = jnp.pad(b_out, (0, D_p - D)).reshape(1, D_p)            # f32

    x_p = jnp.pad(x.astype(f32), ((0, 0), (0, 0), (0, D_p - D)))
    x_p = x_p.astype(jnp.bfloat16)                       # (B, S, D_p) bf16

    kernel = functools.partial(
        _attn_head_kernel, dh_p=dh_p, scale=1.0 / math.sqrt(d_head),
        causal=bool(causal_mask))

    # Explicit scoped-VMEM request (double-buffered inputs/outputs + scratch),
    # clamped so it is safe on v5e (16 MiB default) and v7x (64 MiB physical).
    est = (2 * (S * D_p * 2                  # x (bf16)
                + D_p * 3 * dh_p * 2         # per-head qkv slab (bf16)
                + 3 * dh_p * 4               # qkv bias (f32)
                + dh_p * D_p * 2             # per-head out slab (bf16)
                + D_p * 4                    # out bias (f32)
                + S * D_p * 4)               # output block (f32)
           + S * D_p * 4)                    # accumulator scratch (f32)
    vmem_limit = int(min(max(4 * est, 16 * 2**20), 56 * 2**20))

    out_p = pl.pallas_call(
        kernel,
        out_shape=jax.ShapeDtypeStruct((B, S, D_p), jnp.float32),
        grid_spec=pltpu.PrefetchScalarGridSpec(
            num_scalar_prefetch=0,
            grid=(B, H),
            in_specs=[
                pl.BlockSpec((1, S, D_p), lambda b, h: (b, 0, 0)),
                pl.BlockSpec((1, D_p, 3 * dh_p), lambda b, h: (h, 0, 0)),
                pl.BlockSpec((1, 1, 3 * dh_p), lambda b, h: (h, 0, 0)),
                pl.BlockSpec((1, dh_p, D_p), lambda b, h: (h, 0, 0)),
                pl.BlockSpec((1, D_p), lambda b, h: (0, 0)),
            ],
            out_specs=pl.BlockSpec((1, S, D_p), lambda b, h: (b, 0, 0)),
            scratch_shapes=[pltpu.VMEM((S, D_p), jnp.float32)],
        ),
        compiler_params=pltpu.CompilerParams(
            dimension_semantics=("parallel", "arbitrary"),
            vmem_limit_bytes=vmem_limit),
    )(x_p, w_qkv_h, b_qkv_h, w_out_h, b_out_p)

    return out_p[:, :, :D].astype(x.dtype)


def _reference(x, w_in, b_in, w_out, b_out, n_heads, causal_mask=False):
    """Pure-JAX (f32) mirror of the PyTorch forward, for verification."""
    B, S, D = x.shape
    dh = D // n_heads
    qkv = x @ w_in.T + b_in
    q, k, v = jnp.split(qkv, 3, axis=-1)
    q = q.reshape(B, S, n_heads, dh).transpose(0, 2, 1, 3)
    k = k.reshape(B, S, n_heads, dh).transpose(0, 2, 1, 3)
    v = v.reshape(B, S, n_heads, dh).transpose(0, 2, 1, 3)
    w = jnp.einsum("bhqd,bhkd->bhqk", q, k)
    if causal_mask:
        row = jnp.arange(S)[:, None]
        col = jnp.arange(S)[None, :]
        w = jnp.where(col > row, -jnp.inf, w)
    w = w / math.sqrt(dh)
    w = jax.nn.softmax(w, axis=-1)
    o = jnp.einsum("bhqk,bhkd->bhqd", w, v)
    o = o.transpose(0, 2, 1, 3).reshape(B, S, D)
    return o @ w_out.T + b_out


if __name__ == "__main__":
    # Small shapes consistent with the module's forward: (B, S, D).
    B, S, D = 2, 8, 32
    n_heads = 4

    key = jax.random.PRNGKey(0)
    kx, kw1, kb1, kw2, kb2 = jax.random.split(key, 5)

    x = jax.random.normal(kx, (B, S, D), dtype=jnp.float32)

    bound = 1.0 / math.sqrt(D)
    w_in = jax.random.uniform(kw1, (3 * D, D), jnp.float32, -bound, bound)
    b_in = jax.random.uniform(kb1, (3 * D,), jnp.float32, -bound, bound)
    w_out = jax.random.uniform(kw2, (D, D), jnp.float32, -bound, bound)
    b_out = jax.random.uniform(kb2, (D,), jnp.float32, -bound, bound)

    for causal in (False, True):
        out = self_attention(x, w_in, b_in, w_out, b_out,
                             n_heads=n_heads, causal_mask=causal)
        out = jax.block_until_ready(out)
        ref = _reference(x, w_in, b_in, w_out, b_out, n_heads,
                         causal_mask=causal)
        assert out.shape == (B, S, D)
        # bf16 MXU operands with f32 accumulation -> loose-but-meaningful tol.
        assert float(jnp.max(jnp.abs(out - ref))) < 5e-2, \
            f"mismatch vs reference (causal={causal})"

    print("KERNEL_OK")
</pallas_src>

<mosaic_0001>
module attributes {stable_mosaic.version = 11 : i64} {
  func.func @_attn_head_kernel(%arg0: i32, %arg1: i32, %arg2: memref<1x8x128xbf16, #tpu.memory_space<vmem>>, %arg3: memref<1x128x384xbf16, #tpu.memory_space<vmem>>, %arg4: memref<1x1x384xf32, #tpu.memory_space<vmem>>, %arg5: memref<1x128x128xbf16, #tpu.memory_space<vmem>>, %arg6: memref<1x128xf32, #tpu.memory_space<vmem>>, %arg7: memref<1x8x128xf32, #tpu.memory_space<vmem>>, %arg8: memref<8x128xf32, #tpu.memory_space<vmem>>) attributes {dimension_semantics = [#tpu.dimension_semantics<parallel>, #tpu.dimension_semantics<arbitrary>], iteration_bounds = array<i64: 2, 4>, scalar_prefetch = 0 : i64, scratch_operands = 1 : i64, tpu.core_type = #tpu.core_type<tc>, window_params = [{transform_indices = @transform_0, window_bounds = array<i64: 1, 8, 128>}, {transform_indices = @transform_1, window_bounds = array<i64: 1, 128, 384>}, {transform_indices = @transform_2, window_bounds = array<i64: 1, 1, 384>}, {transform_indices = @transform_3, window_bounds = array<i64: 1, 128, 128>}, {pipeline_mode = #tpu.pipeline_mode<synchronous>, transform_indices = @transform_4, window_bounds = array<i64: 1, 128>}, {transform_indices = @transform_5, window_bounds = array<i64: 1, 8, 128>}]} {
    %c0 = arith.constant 0 : index
    %c0_0 = arith.constant 0 : index
    %c0_1 = arith.constant 0 : index
    %0 = vector.load %arg2[%c0, %c0_0, %c0_1] : memref<1x8x128xbf16, #tpu.memory_space<vmem>>, vector<1x8x128xbf16>
    %1 = vector.shape_cast %0 : vector<1x8x128xbf16> to vector<8x128xbf16>
    %c0_2 = arith.constant 0 : index
    %c0_3 = arith.constant 0 : index
    %c0_4 = arith.constant 0 : index
    %2 = vector.load %arg3[%c0_2, %c0_3, %c0_4] : memref<1x128x384xbf16, #tpu.memory_space<vmem>>, vector<1x128x384xbf16>
    %3 = vector.shape_cast %2 : vector<1x128x384xbf16> to vector<128x384xbf16>
    %cst = arith.constant dense<0.000000e+00> : vector<8x384xf32>
    %4 = tpu.matmul %1, %3, %cst {dimension_numbers = #tpu.dot_dimension_numbers<[1], [0], [0], [1], [0, 0, 1, 1], [], []>} : vector<8x128xbf16>, vector<128x384xbf16>, vector<8x384xf32> -> vector<8x384xf32>
    %c0_5 = arith.constant 0 : index
    %c0_6 = arith.constant 0 : index
    %c0_7 = arith.constant 0 : index
    %5 = vector.load %arg4[%c0_5, %c0_6, %c0_7] : memref<1x1x384xf32, #tpu.memory_space<vmem>>, vector<1x1x384xf32>
    %6 = vector.shape_cast %5 : vector<1x1x384xf32> to vector<1x384xf32>
    %7 = vector.broadcast %6 : vector<1x384xf32> to vector<8x384xf32>
    %8 = arith.addf %4, %7 : vector<8x384xf32>
    %9 = vector.extract_strided_slice %8 {offsets = [0, 0], sizes = [8, 128], strides = [1, 1]} : vector<8x384xf32> to vector<8x128xf32>
    %cst_8 = arith.constant 0.353553385 : f32
    %10 = vector.broadcast %cst_8 : f32 to vector<8x128xf32>
    %11 = arith.mulf %9, %10 : vector<8x128xf32>
    %12 = arith.truncf %11 : vector<8x128xf32> to vector<8x128xbf16>
    %13 = vector.extract_strided_slice %8 {offsets = [0, 128], sizes = [8, 128], strides = [1, 1]} : vector<8x384xf32> to vector<8x128xf32>
    %14 = arith.truncf %13 : vector<8x128xf32> to vector<8x128xbf16>
    %15 = vector.extract_strided_slice %8 {offsets = [0, 256], sizes = [8, 128], strides = [1, 1]} : vector<8x384xf32> to vector<8x128xf32>
    %16 = arith.truncf %15 : vector<8x128xf32> to vector<8x128xbf16>
    %cst_9 = arith.constant dense<0.000000e+00> : vector<8x8xf32>
    %17 = tpu.matmul %12, %14, %cst_9 {dimension_numbers = #tpu.dot_dimension_numbers<[1], [1], [0], [0], [0, 0, 1, 0], [], []>} : vector<8x128xbf16>, vector<8x128xbf16>, vector<8x8xf32> -> vector<8x8xf32>
    %cst_10 = arith.constant dense<0xFF800000> : vector<8xf32>
    %18 = vector.multi_reduction <maximumf>, %17, %cst_10 [1] : vector<8x8xf32> to vector<8xf32>
    %19 = vector.shape_cast %18 : vector<8xf32> to vector<8x1xf32>
    %20 = vector.broadcast %19 : vector<8x1xf32> to vector<8x8xf32>
    %21 = arith.subf %17, %20 : vector<8x8xf32>
    %22 = math.exp %21 : vector<8x8xf32>
    %cst_11 = arith.constant dense<0.000000e+00> : vector<8xf32>
    %23 = vector.multi_reduction <add>, %22, %cst_11 [1] : vector<8x8xf32> to vector<8xf32>
    %24 = vector.shape_cast %23 : vector<8xf32> to vector<8x1xf32>
    %25 = tpu.reciprocal %24 {approx = true} : vector<8x1xf32> -> vector<8x1xf32>
    %26 = vector.broadcast %25 : vector<8x1xf32> to vector<8x8xf32>
    %27 = arith.mulf %22, %26 : vector<8x8xf32>
    %28 = arith.truncf %27 : vector<8x8xf32> to vector<8x8xbf16>
    %cst_12 = arith.constant dense<0.000000e+00> : vector<8x128xf32>
    %29 = tpu.matmul %28, %16, %cst_12 {dimension_numbers = #tpu.dot_dimension_numbers<[1], [0], [0], [1], [0, 0, 1, 1], [], []>} : vector<8x8xbf16>, vector<8x128xbf16>, vector<8x128xf32> -> vector<8x128xf32>
    %30 = arith.truncf %29 : vector<8x128xf32> to vector<8x128xbf16>
    %c0_13 = arith.constant 0 : index
    %c0_14 = arith.constant 0 : index
    %c0_15 = arith.constant 0 : index
    %31 = vector.load %arg5[%c0_13, %c0_14, %c0_15] : memref<1x128x128xbf16, #tpu.memory_space<vmem>>, vector<1x128x128xbf16>
    %32 = vector.shape_cast %31 : vector<1x128x128xbf16> to vector<128x128xbf16>
    %cst_16 = arith.constant dense<0.000000e+00> : vector<8x128xf32>
    %33 = tpu.matmul %30, %32, %cst_16 {dimension_numbers = #tpu.dot_dimension_numbers<[1], [0], [0], [1], [0, 0, 1, 1], [], []>} : vector<8x128xbf16>, vector<128x128xbf16>, vector<8x128xf32> -> vector<8x128xf32>
    %c0_i32 = arith.constant 0 : i32
    %34 = arith.cmpi eq, %arg1, %c0_i32 : i32
    %35 = arith.extui %34 : i1 to i32
    %c0_i32_17 = arith.constant 0 : i32
    %36 = arith.cmpi ne, %35, %c0_i32_17 : i32
    scf.if %36 {
      %c0_23 = arith.constant 0 : index
      %c0_24 = arith.constant 0 : index
      %43 = vector.load %arg6[%c0_23, %c0_24] : memref<1x128xf32, #tpu.memory_space<vmem>>, vector<1x128xf32>
      %44 = vector.shape_cast %43 : vector<1x128xf32> to vector<1x128xf32>
      %45 = vector.broadcast %44 : vector<1x128xf32> to vector<8x128xf32>
      %c0_25 = arith.constant 0 : index
      %c0_26 = arith.constant 0 : index
      %46 = vector.load %arg8[%c0_25, %c0_26] : memref<8x128xf32, #tpu.memory_space<vmem>>, vector<8x128xf32>
      tpu.vector_store %arg8[%c0_25, %c0_26], %45 {strides = array<i32>} : memref<8x128xf32, #tpu.memory_space<vmem>>, vector<8x128xf32>,
    } else {
    }
    %c0_18 = arith.constant 0 : index
    %c0_19 = arith.constant 0 : index
    %37 = vector.load %arg8[%c0_18, %c0_19] : memref<8x128xf32, #tpu.memory_space<vmem>>, vector<8x128xf32>
    %38 = arith.addf %37, %33 : vector<8x128xf32>
    %c0_20 = arith.constant 0 : index
    %c0_21 = arith.constant 0 : index
    %39 = vector.load %arg8[%c0_20, %c0_21] : memref<8x128xf32, #tpu.memory_space<vmem>>, vector<8x128xf32>
    tpu.vector_store %arg8[%c0_20, %c0_21], %38 {strides = array<i32>} : memref<8x128xf32, #tpu.memory_space<vmem>>, vector<8x128xf32>,
    %c3_i32 = arith.constant 3 : i32
    %40 = arith.cmpi eq, %arg1, %c3_i32 : i32
    %41 = arith.extui %40 : i1 to i32
    %c0_i32_22 = arith.constant 0 : i32
    %42 = arith.cmpi ne, %41, %c0_i32_22 : i32
    scf.if %42 {
      %c0_23 = arith.constant 0 : index
      %c0_24 = arith.constant 0 : index
      %43 = vector.load %arg8[%c0_23, %c0_24] : memref<8x128xf32, #tpu.memory_space<vmem>>, vector<8x128xf32>
      %c0_25 = arith.constant 0 : index
      %c0_26 = arith.constant 0 : index
      %c0_27 = arith.constant 0 : index
      %44 = vector.load %arg7[%c0_25, %c0_26, %c0_27] : memref<1x8x128xf32, #tpu.memory_space<vmem>>, vector<1x8x128xf32>
      %45 = vector.shape_cast %44 : vector<1x8x128xf32> to vector<8x128xf32>
      %46 = vector.shape_cast %43 : vector<8x128xf32> to vector<1x8x128xf32>
      tpu.vector_store %arg7[%c0_25, %c0_26, %c0_27], %46 {strides = array<i32>} : memref<1x8x128xf32, #tpu.memory_space<vmem>>, vector<1x8x128xf32>,
    } else {
    }
    return
  }
  func.func @transform_0(%arg0: i32, %arg1: i32) -> (i32, i32, i32) {
    %c0_i32 = arith.constant 0 : i32
    %c0_i32_0 = arith.constant 0 : i32
    %c0_i32_1 = arith.constant 0 : i32
    return %arg0, %c0_i32, %c0_i32_0 : i32, i32, i32
  }
  func.func @transform_1(%arg0: i32, %arg1: i32) -> (i32, i32, i32) {
    %c0_i32 = arith.constant 0 : i32
    %c0_i32_0 = arith.constant 0 : i32
    %c0_i32_1 = arith.constant 0 : i32
    return %arg1, %c0_i32, %c0_i32_0 : i32, i32, i32
  }
  func.func @transform_2(%arg0: i32, %arg1: i32) -> (i32, i32, i32) {
    %c0_i32 = arith.constant 0 : i32
    %c0_i32_0 = arith.constant 0 : i32
    %c0_i32_1 = arith.constant 0 : i32
    return %arg1, %c0_i32, %c0_i32_0 : i32, i32, i32
  }
  func.func @transform_3(%arg0: i32, %arg1: i32) -> (i32, i32, i32) {
    %c0_i32 = arith.constant 0 : i32
    %c0_i32_0 = arith.constant 0 : i32
    %c0_i32_1 = arith.constant 0 : i32
    return %arg1, %c0_i32, %c0_i32_0 : i32, i32, i32
  }
  func.func @transform_4(%arg0: i32, %arg1: i32) -> (i32, i32) {
    %c0_i32 = arith.constant 0 : i32
    %c0_i32_0 = arith.constant 0 : i32
    %c0_i32_1 = arith.constant 0 : i32
    return %c0_i32, %c0_i32_0 : i32, i32
  }
  func.func @transform_5(%arg0: i32, %arg1: i32) -> (i32, i32, i32) {
    %c0_i32 = arith.constant 0 : i32
    %c0_i32_0 = arith.constant 0 : i32
    %c0_i32_1 = arith.constant 0 : i32
    return %arg0, %c0_i32, %c0_i32_0 : i32, i32, i32
  }
}

</mosaic_0001>

<bundles_post_ra>
// kernel: tpu_custom_call.1
= control target key start
LH: loop header
LB: loop body
LE: loop exit
PB: predicated region body
PF: predicated region fallthrough
CT: control target
= control target key end

     0   :  { %s1960_s0 = inlined_call_operand.hbm [shape: bf16[2,8,128], index: 0, kind: input, shape index: {}]   ;;  %s1961_s1 = inlined_call_operand.hbm [shape: bf16[4,128,384], index: 1, kind: input, shape index: {}]   ;;  %s1962_s2 = inlined_call_operand.hbm [shape: f32[4,1,384], index: 2, kind: input, shape index: {}]   ;;  %s1963_s3 = inlined_call_operand.hbm [shape: bf16[4,128,128], index: 3, kind: input, shape index: {}]   ;;  %s1964_s4 = inlined_call_operand.vmem [shape: f32[1,128], index: 4, kind: input, shape index: {}]   ;;  %s1965_s5 = inlined_call_operand.hbm [shape: f32[2,8,128], index: 5, kind: output, shape index: {}]  }
   0x1   :  { %1978 = sst [smem:[#allocation27_spill]] %s1960_s0 }
   0x2   :  { %1979 = sst [smem:[#allocation28_spill]] %s1961_s1 }
   0x3   :  { %1980 = sst [smem:[#allocation29_spill]] %s1965_s5 }
   0x4   :  { %10 = vsyncpa [#allocation4], 0 }
   0x5   :  { %12 = vsyncpa [#allocation4 + $0x1], 0 }
   0x6   :  { %13 = vsyncpa [#allocation7], 0 }
   0x7   :  { %15 = vsyncpa [#allocation7 + $0x1], 0 }
   0x8   :  { %16 = vsyncpa [#allocation10], 0 }
   0x9   :  { %18 = vsyncpa [#allocation10 + $0x1], 0 }
   0xa   :  { %19 = vsyncpa [#allocation5], 0 }
   0xb   :  { %21 = vsyncpa [#allocation5 + $0x1], 0  ;;  %s1606_s18 = smov 0   ;;  %s1608_s19 = smov 0  }
   0xc   :  { %s1610_s20 = smov 0   ;;  %s1612_s21 = smov 0  }
   0xd   :  { %s1614_s22 = smov 0   ;;  %s1616_s23 = smov 0  }
   0xe   :  { %s1618_s24 = smov 0   ;;  %s1620_s25 = smov 0  }
   0xf   :  { %s1622_s26 = smov 0   ;;  %s1624_s27 = smov 0  }
  0x10   :  { %s1626_s28 = smov 0  }
  0x11 LB: > { %1981 = sst [smem:[#allocation16_spill]] %s1530_s20  ;;  %p54_p0 = scmp.eq.s32.totalorder %s1562_s28, 0  ;;  %s1562_s28 = sphi %s1626_s28, %s27_s28   ;;  %s1558_s27 = sphi %s1624_s27, %s2026_s27   ;;  %s1554_s26 = sphi %s1622_s26, %s2025_s26   ;;  %s1550_s25 = sphi %s1620_s25, %s2017_s25   ;;  %s1546_s24 = sphi %s1618_s24, %s2024_s24   ;;  %s1542_s23 = sphi %s1616_s23, %s2016_s23   ;;  %s1538_s22 = sphi %s1614_s22, %s2023_s22   ;;  %s1534_s21 = sphi %s1612_s21, %s2022_s21   ;;  %s1530_s20 = sphi %s1610_s20, %s2014_s20   ;;  %s1526_s19 = sphi %s1608_s19, %s2021_s19   ;;  %s1522_s18 = sphi %s1606_s18, %s2020_s18  }
  0x12   : > { %1982 = sst [smem:[#allocation17_spill]] %s1534_s21  ;;  %p79_p1 = scmp.ne.s32.totalorder %s1530_s20, %s1526_s19 }
  0x13   : > { %1983 = sst [smem:[#allocation18_spill]] %s1542_s23  ;;  %p1968_p2 = scmp.lt.s32.totalorder %s1562_s28, 8 }
  0x14   : > { %1984 = sst [smem:[#allocation19_spill]] %s1550_s25  ;;  %s229_s30 = sand.u32 1, %s1562_s28  }
  0x15   : > { %1985 = sst [smem:[#allocation20_spill]] %s1558_s27  ;;  %p81_p3 = por %p79_p1, %p54_p0 }
  0x16   : > { %s1670_s6 = sand.u32 1, %s1530_s20   ;;  %s1149_s7 = smul.u32 3072, %s1554_s26 }
  0x17   : > { %s1148_s8 = smul.u32 192, %s1670_s6  ;;  %p1676_p4 = pnand %p1968_p2, %p81_p3 }
  0x18   : > { %s1987_s1 = sld [smem:[#allocation28_spill]]  ;;  %p1029_p5 = scmp.ge.s32.totalorder %s1562_s28, 1 }
  0x19   : > { %s233_s13 = scalar_lea.vmem [#allocation6], %s1148_s8  ;;  %s1684_s15 = scalar_lea.sflag [#allocation7], %s229_s30 }
  0x1a   : > { %s240_s14 = sshll.u32 %s233_s13, 4  ;;  %p1966_p6 = pneg %p1676_p4  ;;  %s241_s14 = int_to_ptr.vmem [resolvable:$true] %s240_s14 }
  0x1b   : > { %s1335_s16 = scalar_lea.vmem %s241_s14, 3072  ;;  %s1564_s17 = smov [#allocation6]  }
  0x1c   : > { %p1336_p7 = scmp.ne.s32.totalorder %s241_s14, %s1335_s16  ;;  %s1340_s29 = sshll.u32 %s1564_s17, 4  ;;  %s1341_s29 = int_to_ptr.vmem [resolvable:$false] %s1340_s29 }
  0x1d   : > { %s1342_s10 = scalar_lea.vmem %s1341_s29, 6144  ;;  %p1343_p10 = scmp.lt.s32.totalorder %s241_s14, %s1341_s29 }
  0x1e   : > { %s239_s12 = scalar_lea.hbm %s1987_s1, %s1149_s7  ;;  %p1338_p8 = pnand %p1336_p7, %p1966_p6 }
  0x1f   : > { %p1344_p11 = scmp.lt.s32.totalorder %s1342_s10, %s1335_s16 }
  0x20   : > { %p1339_p9 = pneg %p1338_p8 }
  0x21   : > { %p1345_p12 = por %p1344_p11, %p1343_p10 }
  0x23   : > { %p1346_p13 = pnand %p1345_p12, %p1339_p9 }
  0x25   : > { %1349 = shalt.err (!%p1346_p13)
}
  0x26   : > { %s1565_s7 = smov 192   ;;  %s1566_s29 = smov 12  }
  0x27   : > { %1170 = dma.hbm_to_vmem [thread:$0]  (!%p1676_p4), %s239_s12, 3072, %s241_s14, %s1684_s15, %s1565_s7, %s1565_s7, %s1566_s29  }
  0x28   : > { %p288_p1 = scmp.lt.s32.totalorder %s1562_s28, 9  ;;  %s1702_s8 = sadd.s32 4294967295, %s1562_s28  }
  0x29   : > { %s1019_s11 = sadd.s32 4294967294, %s1562_s28   ;;  %s36_s13 = sadd.s32 1, %s1554_s26 }
  0x2a   : > { %p1697_p3 = pnand %p1029_p5, %p288_p1  ;;  %s39_s16 = sadd.s32 1, %s1558_s27 }
  0x2b   : > { %p37_p7 = scmp.ge.s32.totalorder %s36_s13, 4  ;;  %s46_s12 = sadd.s32 1, %s1542_s23 }
  0x2c   : > { %p53_p8 = scmp.ne.s32.totalorder %s1542_s23, %s1538_s22  ;;  %p59_p9 = scmp.ne.s32.totalorder %s1538_s22, %s1534_s21 }
  0x2d   : > { %s2028_s13 = smov (%p37_p7, %s36_s13), 0  ;;  %s2030_s16 = smov (!%p37_p7, %s39_s16), %s1558_s27 }
  0x2e   : > { %1989 = sst [smem:[#allocation21_spill]] %s2028_s13  ;;  %p1720_p5 = por %p54_p0, %p53_p8 }
  0x2f   : > { %p60_p10 = scmp.eq.s32.totalorder %s1702_s8, 0  ;;  %p41_p11 = scmp.ge.s32.totalorder %s2030_s16, 2 }
  0x30   : > { %s69_s17 = ssub.s32 %s1554_s26, %s2028_s13  ;;  %s1993_s7 = sadd.s32 1, %s1530_s20 }
  0x31   : > { %p1730_p12 = por %p60_p10, %p59_p9  ;;  %p70_p13 = scmp.eq.s32.totalorder %s69_s17, 0 }
  0x32   : > { %s2032_s16 = smov (%p41_p11, %s2030_s16), 0  ;;  %p85_p0 = scmp.ne.s32.totalorder %s1526_s19, %s1522_s18 }
  0x33   : > { %1992 = sst [smem:[#allocation22_spill]] %s2032_s16  ;;  %s43_s1 = ssub.s32 %s1558_s27, %s2032_s16 }
  0x34   : > { %s1739_s29 = scalar_select %p70_p13, %s1530_s20, %s1993_s7  }
  0x35   : > { %p44_p1 = scmp.eq.s32.totalorder %s43_s1, 0  ;;  %p182_p7 = scmp.eq.s32.totalorder %s1702_s8, 7 }
  0x36   : > { %1994 = sst [smem:[#allocation23_spill]] %s1739_s29  ;;  %p1746_p6 = por %p85_p0, %p60_p10 }
  0x37   : > { %p188_p2 = scmp.eq.s32.totalorder %s1019_s11, 7  ;;  %p1756_p11 = por %p182_p7, %p53_p8 }
  0x38   : > { %s1751_s17 = scalar_select %p44_p1, %s1542_s23, %s46_s12  }
  0x39   : > { %s1997_s5 = scalar_select %p1756_p11, 1, 0 }
  0x3a   : > { %1996 = sst [smem:[#allocation24_spill]] %s1751_s17  ;;  %p1763_p13 = por %p188_p2, %p59_p9 }
  0x3b   : > { %1998 = sst [smem:[#allocation25_spill]] %s1997_s5  ;;  %s211_s1 = sand.u32 1, %s1542_s23  }
  0x3c   : > { %s1999_s7 = scalar_select %p1763_p13, 1, 0 }
  0x3d   : > { %s1023_s18 = sshll.u32 %s1558_s27, 6  ;;  %s1022_s16 = sshll.u32 %s211_s1, 2 }
  0x3e   : > { %2000 = sst [smem:[#allocation26_spill]] %s1999_s7  ;;  %s215_s11 = scalar_lea.vmem [#allocation3], %s1022_s16 }
  0x3f   : > { %s2001_s0 = sld [smem:[#allocation27_spill]]  ;;  %s222_s12 = sshll.u32 %s215_s11, 4  ;;  %s223_s12 = int_to_ptr.vmem [resolvable:$true] %s222_s12 }
  0x40   : > { %p2002_p10 = scmp.lt.s32.totalorder %s1562_s28, 8  ;;  %s1150_s21 = smul.u32 3, %s1670_s6 }
  0x41   : > { %s1151_s5 = smul.u32 48, %s1554_s26  ;;  %s212_s7 = scalar_lea.sflag [#allocation4], %s211_s1 }
  0x42   : > { %p1776_p8 = pnand %p2002_p10, %p1720_p5  ;;  %s1363_s27 = scalar_lea.vmem %s223_s12, 64 }
  0x43   : > { %p1364_p9 = scmp.ne.s32.totalorder %s223_s12, %s1363_s27  ;;  %s1567_s20 = smov [#allocation3]  }
  0x44   : > { %p1352_p2 = pneg %p1776_p8  ;;  %s1368_s16 = sshll.u32 %s1567_s20, 4  ;;  %s1369_s16 = int_to_ptr.vmem [resolvable:$false] %s1368_s16 }
  0x45   : > { %s220_s25 = scalar_lea.hbm %s2001_s0, %s1023_s18  ;;  %s1370_s14 = scalar_lea.vmem %s1369_s16, 128 }
  0x46   : > { %p1366_p0 = pnand %p1364_p9, %p1352_p2  ;;  %p1371_p7 = scmp.lt.s32.totalorder %s223_s12, %s1369_s16 }
  0x47   : > { %p1372_p5 = scmp.lt.s32.totalorder %s1370_s14, %s1363_s27 }
  0x48   : > { %p1367_p1 = pneg %p1366_p0 }
  0x49   : > { %p1373_p10 = por %p1372_p5, %p1371_p7 }
  0x4b   : > { %p1374_p13 = pnand %p1373_p10, %p1367_p1 }
  0x4d   : > { %1377 = shalt.err (!%p1374_p13)
}
  0x4e   : > { %1167 = dma.hbm_to_vmem [thread:$0]  (!%p1776_p8), %s220_s25, 64, %s223_s12, %s212_s7  }
  0x4f   : > { %s260_s18 = scalar_lea.hbm %s1962_s2, %s1151_s5  ;;  %s254_s11 = scalar_lea.vmem [#allocation8], %s1150_s21 }
  0x50   : > { %s262_s0 = sshll.u32 %s254_s11, 4  ;;  %s1026_s20 = sshll.u32 %s1670_s6, 6  ;;  %s263_s0 = int_to_ptr.vmem [resolvable:$true] %s262_s0 }
  0x51   : > { %s1391_s23 = scalar_lea.vmem %s263_s0, 48  ;;  %p2004_p9 = pneg %p1676_p4 }
  0x52   : > { %p1392_p2 = scmp.ne.s32.totalorder %s263_s0, %s1391_s23  ;;  %s1568_s27 = smov [#allocation8]  }
  0x53   : > { %s1396_s16 = sshll.u32 %s1568_s27, 4  ;;  %s1397_s16 = int_to_ptr.vmem [resolvable:$false] %s1396_s16 }
  0x54   : > { %p1394_p0 = pnand %p1392_p2, %p2004_p9  ;;  %s1398_s17 = scalar_lea.vmem %s1397_s16, 96 }
  0x55   : > { %p1399_p13 = scmp.lt.s32.totalorder %s263_s0, %s1397_s16  ;;  %p1400_p8 = scmp.lt.s32.totalorder %s1398_s17, %s1391_s23 }
  0x56   : > { %p1395_p1 = pneg %p1394_p0 }
  0x57   : > { %p1401_p7 = por %p1400_p8, %p1399_p13 }
  0x59   : > { %p1402_p5 = pnand %p1401_p7, %p1395_p1 }
  0x5b   : > { %1405 = shalt.err (!%p1402_p5)
}
  0x5c   : > { %1173 = dma.hbm_to_vmem [thread:$0]  (!%p1676_p4), %s260_s18, 48, %s263_s0, %s1684_s15  }
  0x5d   : > { %s1073_s5 = sshll.u32 %s1554_s26, 10  ;;  %s273_s12 = scalar_lea.vmem [#allocation9], %s1026_s20 }
  0x5e   : > { %s279_s7 = scalar_lea.hbm %s1963_s3, %s1073_s5  ;;  %s280_s14 = sshll.u32 %s273_s12, 4  ;;  %s281_s14 = int_to_ptr.vmem [resolvable:$true] %s280_s14 }
  0x5f   : > { %s270_s29 = scalar_lea.sflag [#allocation10], %s1670_s6  ;;  %s1419_s23 = scalar_lea.vmem %s281_s14, 1024 }
  0x60   : > { %p1420_p10 = scmp.ne.s32.totalorder %s281_s14, %s1419_s23  ;;  %p2005_p2 = pmov %p2004_p9 }
  0x61   : > { %s1569_s1 = smov [#allocation9]  }
  0x62   : > { %p1422_p9 = pnand %p1420_p10, %p2005_p2  ;;  %s1424_s11 = sshll.u32 %s1569_s1, 4  ;;  %s1425_s11 = int_to_ptr.vmem [resolvable:$false] %s1424_s11 }
  0x63   : > { %s1426_s27 = scalar_lea.vmem %s1425_s11, 2048  ;;  %p1427_p1 = scmp.lt.s32.totalorder %s281_s14, %s1425_s11 }
  0x64   : > { %p1423_p0 = pneg %p1422_p9  ;;  %p1428_p13 = scmp.lt.s32.totalorder %s1426_s27, %s1419_s23 }
  0x66   : > { %p1429_p8 = por %p1428_p13, %p1427_p1 }
  0x68   : > { %p1430_p7 = pnand %p1429_p8, %p1423_p0 }
  0x6a   : > { %1433 = shalt.err (!%p1430_p7)
}
  0x6b   : > { %s1570_s0 = smov 64   ;;  %s1571_s15 = smov 4  }
  0x6c   : > { %1176 = dma.hbm_to_vmem [thread:$0]  (!%p1676_p4), %s279_s7, 1024, %s281_s14, %s270_s29, %s1570_s0, %s1570_s0, %s1571_s15  }
  0x6d   : > { %292 = sbr.rel (%p1697_p3) target bundleno = 1309 (0x51d), region = 40  ;;  %s1809_s6 = sand.u32 (!%p1697_p3), 1, %s1538_s22  }
  0x6e   : > { %s1030_s18 = sshll.u32 (!%p1697_p3), %s1809_s6, 2  ;;  %s295_s20 = scalar_lea.sflag (!%p1697_p3), [#allocation4], %s1809_s6 }
  0x6f   : > { %s1813_s16 = scalar_lea.vmem (!%p1697_p3), [#allocation3], %s1030_s18 }
  0x72   : > { %1505 = dma.done.wait (%p1730_p12), %s295_s20, 64  }
  0x73   : > { %1507 = vsyncadd (%p1730_p12), %s295_s20, 4294967232  ;;  %s303_s9 = sand.u32 1, %s1702_s8   ;;  %s305_s30 = sand.u32 1, %s1526_s19  }
  0x74   : > { %s1152_s17 = smul.u32 192, %s305_s30  ;;  %s304_s5 = scalar_lea.sflag [#allocation7], %s303_s9 }
  0x76   : > { %s1821_s21 = scalar_lea.vmem [#allocation6], %s1152_s17 }
  0x77   : > { %1509 = dma.done.wait (%p1746_p6), %s304_s5, 3120  }
  0x78   : > { %1511 = vsyncadd (%p1746_p6), %s304_s5, 4294964176  ;;  %s1153_s25 = smul.u32 3, %s305_s30  ;;  %s1031_s7 = sshll.u32 %s305_s30, 6 }
  0x79   : > { %s322_s10 = scalar_lea.sflag [#allocation10], %s305_s30  ;;  %s1829_s14 = scalar_lea.vmem [#allocation9], %s1031_s7 }
  0x7a   : > { %s1827_s12 = scalar_lea.vmem [#allocation8], %s1153_s25 }
  0x7b   : > { %1513 = dma.done.wait (%p1746_p6), %s322_s10, 1024  }
  0x7c   : > { %1515 = vsyncadd (%p1746_p6), %s322_s10, 4294966272  ;;  %s1032_s8 = sshll.u32 %s1809_s6, 3  ;;  %v1572_v0 = vmov 0   ;;  %v1573_v1 = vmov 0.0   ;;  %v1278_v2 = vld [vmem:[%s1821_s21 + $0xac] ss:$12 sps:$4 sm:$0xff]   ;;  %v403_v27 = vlaneseq }
  0x7d   : > { %578 = vmatprep.mubr.bf16.mxu0 %v1572_v0  ;;  %1096 = vmatprep.subr.bf16.mxu1 %v1573_v1  ;;  %v1280_v3 = vld [vmem:[%s1821_s21 + $0xa8] ss:$12 sps:$4 sm:$0xff]   ;;  %v1283_v5 = vld [vmem:[%s1821_s21 + $0x90] ss:$12 sps:$4 sm:$0xff]   ;;  %v1286_v7 = vld [vmem:[%s1821_s21 + $0x78] ss:$12 sps:$4 sm:$0xff]  }
  0x7e   : > { %546 = vmatprep.subr.bf16.mxu0 %v1278_v2  ;;  %v1281_v4 = vld [vmem:[%s1821_s21 + $0x94] ss:$12 sps:$4 sm:$0xff]   ;;  %v1284_v6 = vld [vmem:[%s1821_s21 + $0x7c] ss:$12 sps:$4 sm:$0xff]   ;;  %v1287_v8 = vld [vmem:[%s1821_s21 + $0x64] ss:$12 sps:$4 sm:$0xff]  }
  0x7f   : > { %547 = vmatpush1.bf16.msra.mxu0 %v1280_v3  ;;  %v1289_v9 = vld [vmem:[%s1821_s21 + $0x60] ss:$12 sps:$4 sm:$0xff]   ;;  %v1302_v10 = vld [vmem:[%s1821_s21 + $0xb0] ss:$12 sps:$4 sm:$0xff]   ;;  %v1303_v12 = vld [vmem:[%s1821_s21 + $0x98] ss:$12 sps:$4 sm:$0xff]  }
  0x80   : > { %548 = vmatprep.subr.bf16.mxu0 %v1281_v4  ;;  %v1290_v11 = vld [vmem:[%s1821_s21 + $0x4c] ss:$12 sps:$4 sm:$0xff]   ;;  %1097 = vmatpush3.bf16.msra.mxu1 %v1302_v10  ;;  %v1292_v13 = vld [vmem:[%s1821_s21 + $0x48] ss:$12 sps:$4 sm:$0xff]   ;;  %v1295_v15 = vld [vmem:[%s1821_s21 + $0x30] ss:$12 sps:$4 sm:$0xff]  }
  0x81   : > { %1098 = vmatprep.subr.bf16.mxu1 %v1573_v1  ;;  %v1293_v14 = vld [vmem:[%s1821_s21 + $0x34] ss:$12 sps:$4 sm:$0xff]   ;;  %v1296_v17 = vld [vmem:[%s1821_s21 + $0x1c] ss:$12 sps:$4 sm:$0xff]   ;;  %v1298_v19 = vld [vmem:[%s1821_s21 + $0x18] ss:$12 sps:$4 sm:$0xff]  }
  0x82   : > { %v1304_v16 = vld [vmem:[%s1821_s21 + $0x80] ss:$12 sps:$4 sm:$0xff]   ;;  %v1305_v18 = vld [vmem:[%s1821_s21 + $0x68] ss:$12 sps:$4 sm:$0xff]   ;;  %v1299_v20 = vld [vmem:[%s1821_s21 + $0x4] ss:$12 sps:$4 sm:$0xff]  }
  0x83   : > { %549 = vmatpush1.bf16.msra.mxu0 %v1283_v5  ;;  %v1306_v21 = vld [vmem:[%s1821_s21 + $0x50] ss:$12 sps:$4 sm:$0xff]   ;;  %v1301_v22 = vld [vmem:[%s1821_s21] ss:$12 sps:$4 sm:$0xff]   ;;  %v1307_v23 = vld [vmem:[%s1821_s21 + $0x38] ss:$12 sps:$4 sm:$0xff]  }
  0x84   : > { %550 = vmatprep.subr.bf16.mxu0 %v1284_v6  ;;  %1099 = vmatpush3.bf16.msra.mxu1 %v1303_v12  ;;  %v368_v24 = vld [vmem:[%s1813_s16] sm:$0xf]  ;;  %v1308_v25 = vld [vmem:[%s1821_s21 + $0x20] ss:$12 sps:$4 sm:$0xff]   ;;  %v1309_v26 = vld [vmem:[%s1821_s21 + $0x8] ss:$12 sps:$4 sm:$0xff]  }
  0x85   : > { %1100 = vmatprep.subr.bf16.mxu1 %v1573_v1  ;;  %vm1574_vm0 = vmmov 0   ;;  %v404_v28 = vshrl.u32 %v403_v27, 7  ;;  %v401_v31 = vld [vmem:[%s1827_s12] sm:$0x7]  ;;  %vm687_vm1 = vcmask 1043456   ;;  %vm671_vm2 = vcmask 64512  }
  0x86   : > { %1112 = vmatprep.mubr.msk.bf16.mxu1 %vm1574_vm0, %v1573_v1  ;;  %v1310_v62 = vld [vmem:[%s1829_s14 + $0x38] sm:$0xff]   ;;  %v1311_v63 = vld [vmem:[%s1829_s14 + $0x30] sm:$0xff]   ;;  %v1312_v0 = vld [vmem:[%s1829_s14 + $0x28] sm:$0xff]   ;;  %s366_s13 = scalar_lea.vmem [#allocation11], %s1032_s8  ;;  %p1066_p4 = scmp.ne.s32.totalorder %s1546_s24, 0 }
  0x87   : > { %551 = vmatpush1.bf16.msra.mxu0 %v1286_v7  ;;  %v409_v29 = vsub.s32 1, %v404_v28  ;;  %v405_v30 = vsub.s32 0, %v404_v28  ;;  %v413_v43 = vsub.s32 2, %v404_v28  ;;  %v1313_v2 = vld [vmem:[%s1829_s14 + $0x20] sm:$0xff]   ;;  %v1314_v3 = vld [vmem:[%s1829_s14 + $0x18] sm:$0xff]   ;;  %v1315_v4 = vld [vmem:[%s1829_s14 + $0x10] sm:$0xff]  }
  0x88   : > { %552 = vmatprep.subr.bf16.mxu0 %v1287_v8  ;;  %1101 = vmatpush3.bf16.msra.mxu1 %v1304_v16  ;;  %v1316_v5 = vld [vmem:[%s1829_s14 + $0x8] sm:$0xff]   ;;  %v1317_v10 = vld [vmem:[%s1829_s14] sm:$0xff]  }
  0x89   : > { %1102 = vmatprep.subr.bf16.mxu1 %v1573_v1  ;;  %v410_v32 = vrot.slane %v401_v31, %v409_v29  ;;  %v406_v33 = vrot.slane %v401_v31, %v405_v30  ;;  %v414_v44 = vrot.slane %v401_v31, %v413_v43 }
  0x8b   : > { %553 = vmatpush1.bf16.msra.mxu0 %v1289_v9 }
  0x8c   : > { %554 = vmatprep.subr.bf16.mxu0 %v1290_v11  ;;  %1103 = vmatpush3.bf16.msra.mxu1 %v1305_v18 }
  0x8d   : > { %1104 = vmatprep.subr.bf16.mxu1 %v1573_v1 }
  0x8f   : > { %555 = vmatpush1.bf16.msra.mxu0 %v1292_v13 }
  0x90   : > { %556 = vmatprep.subr.bf16.mxu0 %v1293_v14  ;;  %1105 = vmatpush3.bf16.msra.mxu1 %v1306_v21 }
  0x91   : > { %1106 = vmatprep.subr.bf16.mxu1 %v1573_v1 }
  0x93   : > { %557 = vmatpush1.bf16.msra.mxu0 %v1295_v15 }
  0x94   : > { %558 = vmatprep.subr.bf16.mxu0 %v1296_v17  ;;  %1107 = vmatpush3.bf16.msra.mxu1 %v1307_v23 }
  0x95   : > { %1108 = vmatprep.subr.bf16.mxu1 %v1573_v1 }
  0x97   : > { %559 = vmatpush1.bf16.msra.mxu0 %v1298_v19 }
  0x98   : > { %560 = vmatprep.subr.bf16.mxu0 %v1299_v20  ;;  %1109 = vmatpush3.bf16.msra.mxu1 %v1308_v25 }
  0x99   : > { %1110 = vmatprep.subr.bf16.mxu1 %v1573_v1 }
  0x9b   : > { %561 = vmatpush1.bf16.msra.mxu0 %v1301_v22 }
  0x9c   : > { %1128 = vmatprep.subr.bf16.mxu0 %v1573_v1  ;;  %1111 = vmatpush3.bf16.msra.mxu1 %v1309_v26 }
  0x9d   : > { %1116 = vmatprep.subr.bf16.mxu1 %v1573_v1 }
  0x9e   : > { %579 = vmatmul.mubr.bf16.vlgmr.msra.gmra.mxu0 %v368_v24 }
  0x9f   : > { %1144 = vmatprep.mubr.msk.bf16.mxu0 %vm1574_vm0, %v1573_v1  ;;  %1113 = vmatmul.mubr.bf16.vlgmr.msra.gmra.mxu1 %v368_v24 }
  0xa0   : > { %1118 = vmatprep.mubr.msk.bf16.mxu1 %vm1574_vm0, %v1573_v1  ;;  %1129 = vmatpush3.bf16.msra.mxu0 %v1310_v62 }
  0xa1   : > { %1130 = vmatprep.subr.bf16.mxu0 %v1573_v1 }
  0xa4   : > { %1131 = vmatpush3.bf16.msra.mxu0 %v1311_v63 }
  0xa5   : > { %1132 = vmatprep.subr.bf16.mxu0 %v1573_v1 }
  0xa8   : > { %1133 = vmatpush3.bf16.msra.mxu0 %v1312_v0 }
  0xa9   : > { %1134 = vmatprep.subr.bf16.mxu0 %v1573_v1 }
  0xac   : > { %1135 = vmatpush3.bf16.msra.mxu0 %v1313_v2 }
  0xad   : > { %1136 = vmatprep.subr.bf16.mxu0 %v1573_v1 }
  0xb0   : > { %1137 = vmatpush3.bf16.msra.mxu0 %v1314_v3 }
  0xb1   : > { %1138 = vmatprep.subr.bf16.mxu0 %v1573_v1 }
  0xb4   : > { %1139 = vmatpush3.bf16.msra.mxu0 %v1315_v4 }
  0xb5   : > { %1140 = vmatprep.subr.bf16.mxu0 %v1573_v1 }
  0xb8   : > { %1141 = vmatpush3.bf16.msra.mxu0 %v1316_v5 }
  0xb9   : > { %1142 = vmatprep.subr.bf16.mxu0 %v1573_v1 }
  0xbc   : > { %1143 = vmatpush3.bf16.msra.mxu0 %v1317_v10 }
 0x15e   : > { %v580_v34 = vpop.f32.mrf.mxu0 }
 0x15f   : > { %v581_v37 = vadd.f32 %v580_v34, %v406_v33  ;;  %v621_v45 = vpop.f32.mrf.mxu1 }
 0x160   : > { %v582_v35 = vpop.f32.mrf.mxu0  ;;  %v622_v46 = vadd.f32 %v621_v45, %v414_v44 }
 0x161   : > { %v583_v36 = vadd.f32 %v582_v35, %v410_v32  ;;  %v627_v41 = vmul.f32 0.35355338, %v581_v37  ;;  %v1114_v47 = vpop.f32.mrf.mxu1 }
 0x162   : > { %v584_v38 = vpop.f32.mrf.mxu0  ;;  %v630_v48 = vpack.c.bf16 %v622_v46, %v622_v46 }
 0x163   : > { %v629_v39 = vpack.c.bf16 %v583_v36, %v583_v36  ;;  %v628_v42 = vpack.c.bf16 %v627_v41, %v627_v41  ;;  %v624_v49 = vpop.f32.mrf.mxu1 }
 0x164   : > { %v585_v40 = vpop.f32.mrf.mxu0  ;;  %v689_v50 = vsel %vm687_vm1, %v630_v48, 0 }
 0x165   : > { %1117 = vmatpush3.bf16.xpose.msra.mxu1 %v629_v39  ;;  %v1115_v51 = vpop.f32.mrf.mxu1 }
 0x166   : > { %1122 = vmatprep.subr.bf16.mxu1 %v1573_v1 }
 0x16c   : > { %1119 = vmatmul.mubr.bf16.vlgmr.msra.gmra.mxu1 %v628_v42 }
 0x16d   : > { %1124 = vmatprep.mubr.msk.bf16.mxu1 %vm1574_vm0, %v1573_v1  ;;  %1123 = vmatpush3.bf16.msra.mxu1 %v689_v50 }
 0x22c   : > { %v665_v52 = vpop.f32.mrf.mxu1 }
 0x22d   : > { %v672_v53 = vsel %vm671_vm2, %v665_v52, -inf }
 0x22e   : > { %673 = vmax.xlane.f32.xlu0 %v672_v53  ;;  %v1120_v54 = vpop.f32.mrf.mxu1 }
 0x230   : > { %v668_v55 = vpop.f32.mrf.mxu1 }
 0x232   : > { %v1121_v56 = vpop.f32.mrf.mxu1 }
 0x2b7   : > { %v674_v57 = vpop.xlane.xlu0 %673 }
 0x2b8   : > { %v675_v58 = vsub.f32 %v665_v52, %v674_v57 }
 0x2ba   : > { %v676_v59 = vmul.f32 1.442695, %v675_v58 }
 0x2bc   : > { %1318 = vpow2.f32 %v676_v59 }
 0x2c9   : > { %v1319_v60 = vpop.eup %1318 }
 0x2ca   : > { %v678_v61 = vsel %vm671_vm2, %v1319_v60, 0.0 }
 0x2cb   : > { %679 = vadd.xlane.f32.xlu0 %v678_v61 }
 0x354   : > { %v680_v6 = vpop.xlane.xlu0 %679 }
 0x355   : > { %1320 = vrcp.f32 %v680_v6 }
 0x362   : > { %v1321_v7 = vpop.eup %1320 }
 0x363   : > { %v682_v8 = vmul.f32 %v1321_v7, %v1319_v60 }
 0x365   : > { %v683_v9 = vpack.c.bf16 %v682_v8, %v682_v8 }
 0x367   : > { %1125 = vmatmul.mubr.msk.bf16.vlgmr.msra.gmra.mxu1 %vm671_vm2, %v683_v9 }
 0x427   : > { %v725_v11 = vpop.f32.mrf.mxu1 }
 0x428   : > { %v731_v12 = vpack.c.bf16 %v725_v11, %v725_v11 }
 0x429   : > { %v1126_v13 = vpop.f32.mrf.mxu1 }
 0x42a   : > { %1145 = vmatmul.mubr.bf16.vlgmr.msra.gmra.mxu0 %v731_v12 }
 0x42b   : > { %v728_v14 = vpop.f32.mrf.mxu1 }
 0x42d   : > { %v1127_v15 = vpop.f32.mrf.mxu1 }
 0x4ea   : > { %v830_v16 = vpop.f32.mrf.mxu0 }
 0x4ec   : > { %v1146_v17 = vpop.f32.mrf.mxu0  ;;  %839 = sbr.rel (%p1066_p4) target bundleno = 1267 (0x4f3), region = 60 }
 0x4ee   : > { %v833_v18 = vpop.f32.mrf.mxu0 }
 0x4f0   : > { %v1147_v1 = vpop.f32.mrf.mxu0 }
 0x4f1   : > { %v1067_v19 = vld [vmem:[%s1964_s4] ss:$0 sm:$0xff] }
 0x4f2   : > { %847 = vst [vmem:[#allocation2] sm:$0xff] %v1067_v19 }
 0x4f3 PF: > { %p1068_p6 = scmp.ne.s32.totalorder %s1546_s24, 3 }
 0x4f8   : > { %854 = sbr.rel (%p1068_p6) target bundleno = 1285 (0x505), region = 64 }
 0x4f9   : > { %v848_v20 = vld [vmem:[#allocation2] sm:$0xff] }
 0x4fa   : > { %v849_v21 = vadd.f32 %v848_v20, %v830_v16 }
 0x4fc   : > { %850 = vst [vmem:[#allocation2] sm:$0xff] %v849_v21 }
 0x503   : > { %v855_v22 = vld [vmem:[#allocation2] sm:$0xff] }
 0x504   : > { %856 = vst [vmem:[%s366_s13] sm:$0xff] %v855_v22 }
 0x505 PF: > { %s2006_s1 = sld [smem:[#allocation19_spill]]  ;;  %s871_s9 = sshll.u32 %s366_s13, 4  ;;  %s872_s9 = int_to_ptr.vmem [resolvable:$true] %s871_s9 }
 0x506   : > { %s2008_s18 = sld [smem:[#allocation29_spill]]  ;;  %s858_s30 = scalar_lea.sflag [#allocation5], %s1809_s6 }
 0x507   : > { %s1434_s17 = scalar_lea.vmem %s872_s9, 128  ;;  %s1575_s24 = smov [#allocation11]  }
 0x508   : > { %p1435_p3 = scmp.ne.s32.totalorder %s872_s9, %s1434_s17  ;;  %s1438_s5 = sshll.u32 %s1575_s24, 4  ;;  %s1439_s5 = int_to_ptr.vmem [resolvable:$false] %s1438_s5 }
 0x509   : > { %s1440_s21 = scalar_lea.vmem %s1439_s5, 256  ;;  %p1441_p10 = scmp.lt.s32.totalorder %s872_s9, %s1439_s5 }
 0x50a   : > { %p1436_p12 = pnand %p1435_p3, %p1756_p11  ;;  %p1442_p2 = scmp.lt.s32.totalorder %s1440_s21, %s1434_s17 }
 0x50b   : > { %s1070_s27 = sshll.u32 %s2006_s1, 7 }
 0x50c   : > { %s2009_s16 = smov %s2008_s18  ;;  %s869_s20 = scalar_lea.hbm %s2008_s18, %s1070_s27 }
 0x50d   : > { %p1437_p5 = pneg %p1436_p12  ;;  %p1443_p9 = por %p1442_p2, %p1441_p10 }
 0x50f   : > { %p1444_p0 = pnand %p1443_p9, %p1437_p5 }
 0x511   : > { %1447 = shalt.err (!%p1444_p0)
}
 0x512   : > { %s1448_s25 = scalar_lea.hbm %s869_s20, 128  ;;  %s1452_s12 = scalar_lea.hbm %s2009_s16, 256 }
 0x513   : > { %p1449_p1 = scmp.ne.s32.totalorder %s869_s20, %s1448_s25  ;;  %p1453_p7 = scmp.lt.s32.totalorder %s869_s20, %s2009_s16 }
 0x514   : > { %p1454_p4 = scmp.lt.s32.totalorder %s1452_s12, %s1448_s25 }
 0x515   : > { %p1450_p13 = pnand %p1449_p1, %p1756_p11 }
 0x516   : > { %p1455_p6 = por %p1454_p4, %p1453_p7 }
 0x517   : > { %p1451_p8 = pneg %p1450_p13 }
 0x519   : > { %p1456_p3 = pnand %p1455_p6, %p1451_p8 }
 0x51b   : > { %1459 = shalt.err (!%p1456_p3)
}
 0x51c   : > { %1162 = dma.vmem_to_hbm [thread:$0]  (%p1756_p11), %s872_s9, 128, %s869_s20, %s858_s30  }
 0x51d PF: > { %s2010_s8 = sld [smem:[#allocation17_spill]]  ;;  %p1182_p12 = scmp.ge.s32.totalorder %s1562_s28, 2 }
 0x51e   : > { %s2011_s13 = sld [smem:[#allocation26_spill]] }
 0x523   : > { %s883_s29 = sand.u32 1, %s2010_s8  }
 0x524   : > { %p2012_p5 = scmp.ne.s32.totalorder %s2011_s13, 0  ;;  %s884_s23 = scalar_lea.sflag [#allocation5], %s883_s29 }
 0x526   : > { %p1178_p10 = pnand %p1182_p12, %p2012_p5 }
 0x528   : > { %p1179_p2 = pneg %p1178_p10 }
 0x52a   : > { %1517 = dma.done.wait (%p1179_p2), %s884_s23, 128  }
 0x52b   : > { %1519 = vsyncadd (%p1179_p2), %s884_s23, 4294967168  ;;  %s27_s28 = sadd.s32 1, %s1562_s28   ;;  %s2013_s1 = sld [smem:[#allocation16_spill]] }
 0x52c   : > { %p24_p9 = scmp.ge.s32.totalorder %s27_s28, 10   ;;  %s2014_s20 = sld [smem:[#allocation23_spill]] }
 0x52d   : > { %s2015_s11 = sld [smem:[#allocation18_spill]]  ;;  %s2020_s18 = smov %s1526_s19 }
 0x52e   : > { %s2016_s23 = sld [smem:[#allocation24_spill]]  ;;  %s2022_s21 = smov %s1538_s22 }
 0x52f   : > { %s2017_s25 = sld [smem:[#allocation20_spill]]  ;;  %s2024_s24 = smov %s1554_s26 }
 0x530   : > { %s2018_s27 = sld [smem:[#allocation21_spill]] }
 0x531   : > { %s2019_s0 = sld [smem:[#allocation22_spill]]  ;;  %s2021_s19 = smov %s2013_s1 }
 0x533   : > { %s2023_s22 = smov %s2015_s11  ;;  %26 = sbr.rel (!%p24_p9) target bundleno = 17 (0x11), region = 130 }
 0x536   : > { %s2025_s26 = smov %s2018_s27 }
 0x537   : > { %s2026_s27 = smov %s2019_s0 }
 0x538   :  { %889 = vsyncpa [#allocation4], 1 }
 0x539   :  { %891 = vsyncpa [#allocation4 + $0x1], 1 }
 0x53a   :  { %892 = vsyncpa [#allocation7], 1 }
 0x53b   :  { %894 = vsyncpa [#allocation7 + $0x1], 1 }
 0x53c   :  { %895 = vsyncpa [#allocation10], 1 }
 0x53d   :  { %897 = vsyncpa [#allocation10 + $0x1], 1 }
 0x53e   :  { %898 = vsyncpa [#allocation5], 1 }
 0x53f   :  { %900 = vsyncpa [#allocation5 + $0x1], 1 }

</bundles_post_ra>
